<compile_context>
chip_gen: v7x
topology: tpu7x:2x2x1
jax: 0.10.0
libtpu: 0.0.40
codegen_flags: <defaults>
</compile_context>

<pallas_src>
import numpy as np
import jax
import jax.numpy as jnp
from jax.experimental import pallas as pl
from jax.experimental.pallas import tpu as pltpu


def _num_tensorcores():
    """Best-effort TensorCore-per-chip count (2 on v7x-style chips, else 1)."""
    try:
        info = pltpu.get_tpu_info()
        for name in ("num_cores", "core_count", "num_tensor_cores",
                     "tensor_cores_per_chip", "cores_per_chip"):
            v = getattr(info, name, None)
            if isinstance(v, int) and v > 0:
                return min(int(v), 2)
    except Exception:
        pass
    try:
        v = getattr(jax.devices()[0], "num_cores", None)
        if isinstance(v, int) and v > 0:
            return min(int(v), 2)
    except Exception:
        pass
    return 1


def _make_nj_kernel(H, W, TH, Wp, n_inner, two_split, needs_row_mask,
                    gate_overflow):
    PI = float(np.pi)
    G = TH // 8  # row groups of 8 sublanes

    def disp_row(ref, r):
        th = ref[0, r:r + 1, :]
        a0 = ref[1, r:r + 1, :]
        a1 = ref[2, r:r + 1, :]
        cc = jnp.cos(th * PI)
        ss = jnp.sin(th * PI)
        cm = cc - 1.0
        return cm * a0 - ss * a1, ss * a0 + cm * a1

    def kernel(*refs):
        if two_split:
            flow_ref, top_ref, bot_ref, out_ref, carry_ref = refs
            p = pl.program_id(0)
            i = pl.program_id(1)
            t = p * n_inner + i
        else:
            flow_ref, bot_ref, out_ref, carry_ref = refs
            top_ref = None
            i = pl.program_id(0)
            t = i
        r0 = t * TH

        @pl.when(i == 0)
        def _init():
            out_ref[...] = jnp.zeros_like(out_ref)

        def body():
            one = jnp.float32(1.0)
            half = jnp.float32(0.5)
            zero = jnp.float32(0.0)

            # ---- displacement (identity grid removed; cm = cos-1 folds -u) --
            theta = flow_ref[0]
            u0 = flow_ref[1]
            u1 = flow_ref[2]
            c = jnp.cos(theta * PI)
            s = jnp.sin(theta * PI)
            cm = c - one
            d0 = cm * u0 - s * u1            # new_locs[...,0] - row index
            d1 = s * u0 + cm * u1            # new_locs[...,1] - col index

            # row r0+TH (bottom halo) displacement
            bot_d0, bot_d1 = disp_row(bot_ref, 0)

            # row r0-1 displacement: carried from the previous tile on this
            # core; only the first tile of a core (i==0) needs the HBM halo.
            prev_d0 = carry_ref[0:1, :]
            prev_d1 = carry_ref[1:2, :]
            if two_split:
                tp_d0, tp_d1 = disp_row(top_ref, 7)
                at_start = i == 0
                prev_d0 = jnp.where(at_start, tp_d0, prev_d0)
                prev_d1 = jnp.where(at_start, tp_d1, prev_d1)
            # single-split: at i==0 every is_first row is also is_top, which
            # clamps prv = f, so the uninitialized carry is never consumed.

            # ---- masks ------------------------------------------------------
            lrow = jax.lax.broadcasted_iota(jnp.int32, (TH, Wp), 0)
            lcol = jax.lax.broadcasted_iota(jnp.int32, (TH, Wp), 1)
            grow = lrow + r0

            is_top = grow == 0
            is_bote = grow == (H - 1)
            is_botc = (grow >= (H - 1)) if needs_row_mask else is_bote
            is_first = lrow == 0
            is_last = lrow == (TH - 1)
            is_left = lcol == 0
            is_right = lcol == (W - 1)       # real right edge (cols >= W pad)

            row_scale = jnp.where(is_top | is_bote, one, half)
            col_scale = jnp.where(is_left | is_right, one, half)

            # torch.gradient: central diff interior, one-sided at edges.
            def g_row(f, pr, bt):
                nxt = pltpu.roll(f, TH - 1, 0)      # f[j+1] (wraps)
                prv = pltpu.roll(f, 1, 0)           # f[j-1] (wraps)
                nxt = jnp.where(is_last, bt, nxt)
                prv = jnp.where(is_first, pr, prv)
                nxt = jnp.where(is_botc, f, nxt)    # clamp at global bottom
                prv = jnp.where(is_top, f, prv)     # clamp at global top
                return row_scale * (nxt - prv)

            def g_col(f):
                nxt = pltpu.roll(f, Wp - 1, 1)
                prv = pltpu.roll(f, 1, 1)
                nxt = jnp.where(is_right, f, nxt)
                prv = jnp.where(is_left, f, prv)
                return col_scale * (nxt - prv)

            gr0 = g_row(d0, prev_d0, bot_d0)
            gr1 = g_row(d1, prev_d1, bot_d1)
            gc0 = g_col(d0)
            gc1 = g_col(d1)

            # +1 terms are the exact identity-grid gradients.
            ja = (gr0 + one) * (gc1 + one) - gc0 * gr1
            neg = jnp.maximum(-ja, zero)             # 0.5 * (|Ja| - Ja)
            if needs_row_mask:
                neg = jnp.where(grow < H, neg, zero)

            # Column-preserving partial reduction: aligned vreg adds only; the
            # single cross-lane/sublane reduce happens once in the wrapper.
            partial = neg[0:8, :]
            for g in range(1, G):
                partial = partial + neg[8 * g:8 * (g + 1), :]
            out_ref[...] += partial

            # carry this tile's last-row displacement for the next tile
            carry_ref[0:1, :] = d0[TH - 1:TH, :]
            carry_ref[1:2, :] = d1[TH - 1:TH, :]

        if gate_overflow:
            @pl.when(r0 < H)
            def _():
                body()
        else:
            body()

    return kernel


def nj_loss_rstf2d(flow, *, max_tile_rows=1024, target_tile_elems=256 * 1024,
                   num_splits=None):
    """flow: (1, 3, H, W) float32 NCHW (theta, u_row, u_col). Scalar loss."""
    assert flow.ndim == 4 and flow.shape[0] == 1 and flow.shape[1] == 3
    f3 = flow[0].astype(jnp.float32)                  # (3, H, W)
    _, H, W = f3.shape
    assert H >= 2 and W >= 2, "torch.gradient needs >= 2 points per spatial dim"

    # Lane/sublane-dense zero padding; real H/W drive the gradient edge logic.
    Wp = -(-W // 128) * 128
    Hp = -(-H // 8) * 8
    if (Hp, Wp) != (H, W):
        f3 = jnp.pad(f3, ((0, 0), (0, Hp - H), (0, Wp - W)))

    # Row tile: multiple of 8, as large as the VMEM budget comfortably allows.
    cap = max(8, min((int(max_tile_rows) // 8) * 8,
                     ((int(target_tile_elems) // Wp) // 8) * 8))
    TH = Hp if Hp <= cap else cap
    assert TH % 8 == 0
    n_tiles = -(-Hp // TH)
    thb = TH // 8
    last_blk = Hp // 8 - 1

    # Split across TensorCores only if the chip actually has more than one.
    if num_splits is None:
        num_splits = _num_tensorcores()
    num_splits = 2 if (num_splits >= 2 and n_tiles >= 2) else 1
    two_split = num_splits == 2
    n_inner = -(-n_tiles // num_splits)

    needs_row_mask = (Hp != H) or (Hp % TH != 0)
    gate_overflow = two_split and (num_splits * n_inner > n_tiles)

    kernel = _make_nj_kernel(H, W, TH, Wp, n_inner, two_split,
                             needs_row_mask, gate_overflow)

    if two_split:
        def t_of(p_, i_):
            return jnp.minimum(p_ * n_inner + i_, n_tiles - 1)
        in_specs = [
            pl.BlockSpec((3, TH, Wp), lambda p, i: (0, t_of(p, i), 0)),
            pl.BlockSpec((3, 8, Wp),                      # row r0-1 (split seed)
                         lambda p, i: (0, jnp.clip(t_of(p, i) * thb - 1,
                                                   0, last_blk), 0)),
            pl.BlockSpec((3, 8, Wp),                      # row r0+TH
                         lambda p, i: (0, jnp.minimum((t_of(p, i) + 1) * thb,
                                                      last_blk), 0)),
        ]
        out_specs = pl.BlockSpec((8, Wp), lambda p, i: (p, 0))
        grid = (num_splits, n_inner)
        semantics = ("parallel", "arbitrary")
        args = (f3, f3, f3)
    else:
        in_specs = [
            pl.BlockSpec((3, TH, Wp), lambda i: (0, i, 0)),
            pl.BlockSpec((3, 8, Wp),                      # row r0+TH
                         lambda i: (0, jnp.minimum((i + 1) * thb, last_blk), 0)),
        ]
        out_specs = pl.BlockSpec((8, Wp), lambda i: (0, 0))
        grid = (n_tiles,)
        semantics = ("arbitrary",)
        args = (f3, f3)

    # Explicit VMEM budget: double-buffered blocks + materialized (TH,Wp) temps,
    # kept well under v7x's 64 MiB while lifting v5e's 16 MiB scoped default.
    block_bytes = 4 * Wp * (2 * 3 * TH + 2 * 3 * 8 * (2 if two_split else 1)
                            + 2 * 8 + 2)
    temps_bytes = 4 * Wp * TH * 14
    vmem_limit = int(min(56 * 2 ** 20,
                         max(32 * 2 ** 20,
                             int(1.3 * (block_bytes + temps_bytes)))))

    out = pl.pallas_call(
        kernel,
        out_shape=jax.ShapeDtypeStruct((num_splits * 8, Wp), jnp.float32),
        grid=grid,
        in_specs=in_specs,
        out_specs=out_specs,
        scratch_shapes=[pltpu.VMEM((2, Wp), jnp.float32)],   # last-row carry
        compiler_params=pltpu.CompilerParams(
            dimension_semantics=semantics,
            vmem_limit_bytes=vmem_limit,
        ),
    )(*args)

    # Column-preserving partials: drop padded columns, single final reduce.
    return jnp.sum(out[:, :W])


def _reference_nj_loss(flow_np):
    """Pure numpy reference mirroring the PyTorch forward (rstf2d)."""
    flow = np.asarray(flow_np, dtype=np.float64)
    theta = flow[0, 0]
    u0, u1 = flow[0, 1], flow[0, 2]
    c, s = np.cos(theta * np.pi), np.sin(theta * np.pi)
    H, W = theta.shape
    Y, X = np.meshgrid(np.arange(H), np.arange(W), indexing="ij")
    nl0 = c * u0 - s * u1 - u0 + Y
    nl1 = s * u0 + c * u1 - u1 + X
    new_locs = np.stack([nl0, nl1], axis=-1)          # (H, W, 2)
    dfdx, dfdy, _ = np.gradient(new_locs)             # same scheme as torch.gradient
    ja = dfdx[..., 0] * dfdy[..., 1] - dfdy[..., 0] * dfdx[..., 1]
    return np.sum(0.5 * (np.abs(ja) - ja))


def _check(loss, ref, name):
    ok = abs(float(loss) - float(ref)) < 1e-3 * max(1.0, abs(float(ref)))
    assert ok, (name, float(loss), float(ref))


if __name__ == "__main__":
    key = jax.random.PRNGKey(0)
    k1, k2, k3 = jax.random.split(key, 3)

    # Case 1: tiny single-tile problem (auto core-split selection, W pad 16->128).
    flow1 = jax.random.normal(k1, (1, 3, 16, 16), dtype=jnp.float32) * 0.5
    loss1 = jax.block_until_ready(nj_loss_rstf2d(flow1))
    _check(loss1, _reference_nj_loss(np.asarray(flow1)), "case1")

    # Case 2: single-split streaming path - carry scratch across row tiles,
    # H padded 70->72, W padded 96->128, partial last tile.
    flow2 = jax.random.normal(k2, (1, 3, 70, 96), dtype=jnp.float32) * 0.5
    loss2 = jax.block_until_ready(
        nj_loss_rstf2d(flow2, max_tile_rows=16, num_splits=1))
    _check(loss2, _reference_nj_loss(np.asarray(flow2)), "case2")

    # Case 3: forced 2-way TensorCore split - top-halo seed at each split start,
    # pl.when-gated overflow tile (5 row tiles over a 2x3 grid).
    flow3 = jax.random.normal(k3, (1, 3, 72, 128), dtype=jnp.float32) * 0.5
    loss3 = jax.block_until_ready(
        nj_loss_rstf2d(flow3, max_tile_rows=16, num_splits=2))
    _check(loss3, _reference_nj_loss(np.asarray(flow3)), "case3")

    print("KERNEL_OK")
</pallas_src>

<mosaic_0001>
module attributes {stable_mosaic.version = 11 : i64} {
  func.func @kernel(%arg0: i32, %arg1: memref<3x16x128xf32, #tpu.memory_space<vmem>>, %arg2: memref<3x8x128xf32, #tpu.memory_space<vmem>>, %arg3: memref<8x128xf32, #tpu.memory_space<vmem>>, %arg4: memref<2x128xf32, #tpu.memory_space<vmem>>) attributes {dimension_semantics = [#tpu.dimension_semantics<arbitrary>], iteration_bounds = array<i64: 1>, scalar_prefetch = 0 : i64, scratch_operands = 1 : i64, tpu.core_type = #tpu.core_type<tc>, window_params = [{transform_indices = @transform_0, window_bounds = array<i64: 3, 16, 128>}, {transform_indices = @transform_1, window_bounds = array<i64: 3, 8, 128>}, {pipeline_mode = #tpu.pipeline_mode<synchronous>, transform_indices = @transform_2, window_bounds = array<i64: 8, 128>}]} {
    %c16_i32 = arith.constant 16 : i32
    %0 = arith.muli %arg0, %c16_i32 : i32
    %c0_i32 = arith.constant 0 : i32
    %1 = arith.cmpi eq, %arg0, %c0_i32 : i32
    %2 = arith.extui %1 : i1 to i32
    %c0_i32_0 = arith.constant 0 : i32
    %3 = arith.cmpi ne, %2, %c0_i32_0 : i32
    scf.if %3 {
      %cst_52 = arith.constant 0.000000e+00 : f32
      %127 = vector.broadcast %cst_52 : f32 to vector<8x128xf32>
      %c0_53 = arith.constant 0 : index
      %c0_54 = arith.constant 0 : index
      %128 = vector.load %arg3[%c0_53, %c0_54] : memref<8x128xf32, #tpu.memory_space<vmem>>, vector<8x128xf32>
      tpu.vector_store %arg3[%c0_53, %c0_54], %127 {strides = array<i32>} : memref<8x128xf32, #tpu.memory_space<vmem>>, vector<8x128xf32>,
    } else {
    }
    %c0 = arith.constant 0 : index
    %c0_1 = arith.constant 0 : index
    %c0_2 = arith.constant 0 : index
    %4 = vector.load %arg1[%c0, %c0_1, %c0_2] : memref<3x16x128xf32, #tpu.memory_space<vmem>>, vector<1x16x128xf32>
    %5 = vector.shape_cast %4 : vector<1x16x128xf32> to vector<16x128xf32>
    %c1 = arith.constant 1 : index
    %c0_3 = arith.constant 0 : index
    %c0_4 = arith.constant 0 : index
    %6 = vector.load %arg1[%c1, %c0_3, %c0_4] : memref<3x16x128xf32, #tpu.memory_space<vmem>>, vector<1x16x128xf32>
    %7 = vector.shape_cast %6 : vector<1x16x128xf32> to vector<16x128xf32>
    %c2 = arith.constant 2 : index
    %c0_5 = arith.constant 0 : index
    %c0_6 = arith.constant 0 : index
    %8 = vector.load %arg1[%c2, %c0_5, %c0_6] : memref<3x16x128xf32, #tpu.memory_space<vmem>>, vector<1x16x128xf32>
    %9 = vector.shape_cast %8 : vector<1x16x128xf32> to vector<16x128xf32>
    %cst = arith.constant 3.14159274 : f32
    %10 = vector.broadcast %cst : f32 to vector<16x128xf32>
    %11 = arith.mulf %5, %10 : vector<16x128xf32>
    %12 = math.cos %11 : vector<16x128xf32>
    %cst_7 = arith.constant 3.14159274 : f32
    %13 = vector.broadcast %cst_7 : f32 to vector<16x128xf32>
    %14 = arith.mulf %5, %13 : vector<16x128xf32>
    %15 = math.sin %14 : vector<16x128xf32>
    %cst_8 = arith.constant 1.000000e+00 : f32
    %16 = vector.broadcast %cst_8 : f32 to vector<16x128xf32>
    %17 = arith.subf %12, %16 : vector<16x128xf32>
    %18 = arith.mulf %17, %7 : vector<16x128xf32>
    %19 = arith.mulf %15, %9 : vector<16x128xf32>
    %20 = arith.subf %18, %19 : vector<16x128xf32>
    %21 = arith.mulf %15, %7 : vector<16x128xf32>
    %22 = arith.mulf %17, %9 : vector<16x128xf32>
    %23 = arith.addf %21, %22 : vector<16x128xf32>
    %c0_9 = arith.constant 0 : index
    %c0_10 = arith.constant 0 : index
    %c0_11 = arith.constant 0 : index
    %24 = vector.load %arg2[%c0_9, %c0_10, %c0_11] : memref<3x8x128xf32, #tpu.memory_space<vmem>>, vector<1x1x128xf32>
    %25 = vector.shape_cast %24 : vector<1x1x128xf32> to vector<1x128xf32>
    %c1_12 = arith.constant 1 : index
    %c0_13 = arith.constant 0 : index
    %c0_14 = arith.constant 0 : index
    %26 = vector.load %arg2[%c1_12, %c0_13, %c0_14] : memref<3x8x128xf32, #tpu.memory_space<vmem>>, vector<1x1x128xf32>
    %27 = vector.shape_cast %26 : vector<1x1x128xf32> to vector<1x128xf32>
    %c2_15 = arith.constant 2 : index
    %c0_16 = arith.constant 0 : index
    %c0_17 = arith.constant 0 : index
    %28 = vector.load %arg2[%c2_15, %c0_16, %c0_17] : memref<3x8x128xf32, #tpu.memory_space<vmem>>, vector<1x1x128xf32>
    %29 = vector.shape_cast %28 : vector<1x1x128xf32> to vector<1x128xf32>
    %cst_18 = arith.constant 3.14159274 : f32
    %30 = vector.broadcast %cst_18 : f32 to vector<1x128xf32>
    %31 = arith.mulf %25, %30 : vector<1x128xf32>
    %32 = math.cos %31 : vector<1x128xf32>
    %cst_19 = arith.constant 3.14159274 : f32
    %33 = vector.broadcast %cst_19 : f32 to vector<1x128xf32>
    %34 = arith.mulf %25, %33 : vector<1x128xf32>
    %35 = math.sin %34 : vector<1x128xf32>
    %cst_20 = arith.constant 1.000000e+00 : f32
    %36 = vector.broadcast %cst_20 : f32 to vector<1x128xf32>
    %37 = arith.subf %32, %36 : vector<1x128xf32>
    %38 = arith.mulf %37, %27 : vector<1x128xf32>
    %39 = arith.mulf %35, %29 : vector<1x128xf32>
    %40 = arith.subf %38, %39 : vector<1x128xf32>
    %41 = arith.mulf %35, %27 : vector<1x128xf32>
    %42 = arith.mulf %37, %29 : vector<1x128xf32>
    %43 = arith.addf %41, %42 : vector<1x128xf32>
    %c0_21 = arith.constant 0 : index
    %c0_22 = arith.constant 0 : index
    %44 = vector.load %arg4[%c0_21, %c0_22] : memref<2x128xf32, #tpu.memory_space<vmem>>, vector<1x128xf32>
    %c1_23 = arith.constant 1 : index
    %c0_24 = arith.constant 0 : index
    %45 = vector.load %arg4[%c1_23, %c0_24] : memref<2x128xf32, #tpu.memory_space<vmem>>, vector<1x128xf32>
    %46 = tpu.iota {dimensions = array<i32: 0>} : vector<16x128xi32>
    %47 = tpu.iota {dimensions = array<i32: 1>} : vector<16x128xi32>
    %48 = vector.broadcast %0 : i32 to vector<16x128xi32>
    %49 = arith.addi %46, %48 : vector<16x128xi32>
    %c0_i32_25 = arith.constant 0 : i32
    %50 = vector.broadcast %c0_i32_25 : i32 to vector<16x128xi32>
    %51 = arith.cmpi eq, %49, %50 : vector<16x128xi32>
    %c15_i32 = arith.constant 15 : i32
    %52 = vector.broadcast %c15_i32 : i32 to vector<16x128xi32>
    %53 = arith.cmpi eq, %49, %52 : vector<16x128xi32>
    %c0_i32_26 = arith.constant 0 : i32
    %54 = vector.broadcast %c0_i32_26 : i32 to vector<16x128xi32>
    %55 = arith.cmpi eq, %46, %54 : vector<16x128xi32>
    %c15_i32_27 = arith.constant 15 : i32
    %56 = vector.broadcast %c15_i32_27 : i32 to vector<16x128xi32>
    %57 = arith.cmpi eq, %46, %56 : vector<16x128xi32>
    %c0_i32_28 = arith.constant 0 : i32
    %58 = vector.broadcast %c0_i32_28 : i32 to vector<16x128xi32>
    %59 = arith.cmpi eq, %47, %58 : vector<16x128xi32>
    %c15_i32_29 = arith.constant 15 : i32
    %60 = vector.broadcast %c15_i32_29 : i32 to vector<16x128xi32>
    %61 = arith.cmpi eq, %47, %60 : vector<16x128xi32>
    %62 = arith.ori %51, %53 : vector<16x128xi1>
    %cst_30 = arith.constant 1.000000e+00 : f32
    %cst_31 = arith.constant 5.000000e-01 : f32
    %63 = vector.broadcast %cst_30 : f32 to vector<16x128xf32>
    %64 = vector.broadcast %cst_31 : f32 to vector<16x128xf32>
    %65 = arith.select %62, %63, %64 : vector<16x128xi1>, vector<16x128xf32>
    %66 = arith.ori %59, %61 : vector<16x128xi1>
    %cst_32 = arith.constant 1.000000e+00 : f32
    %cst_33 = arith.constant 5.000000e-01 : f32
    %67 = vector.broadcast %cst_32 : f32 to vector<16x128xf32>
    %68 = vector.broadcast %cst_33 : f32 to vector<16x128xf32>
    %69 = arith.select %66, %67, %68 : vector<16x128xi1>, vector<16x128xf32>
    %c15_i32_34 = arith.constant 15 : i32
    %70 = tpu.dynamic_rotate %20 by %c15_i32_34 dim 0 : vector<16x128xf32>, i32 -> vector<16x128xf32>
    %c1_i32 = arith.constant 1 : i32
    %71 = tpu.dynamic_rotate %20 by %c1_i32 dim 0 : vector<16x128xf32>, i32 -> vector<16x128xf32>
    %72 = vector.shape_cast %40 : vector<1x128xf32> to vector<1x128xf32>
    %73 = vector.broadcast %72 : vector<1x128xf32> to vector<16x128xf32>
    %74 = arith.select %57, %73, %70 : vector<16x128xi1>, vector<16x128xf32>
    %75 = vector.shape_cast %44 : vector<1x128xf32> to vector<1x128xf32>
    %76 = vector.broadcast %75 : vector<1x128xf32> to vector<16x128xf32>
    %77 = arith.select %55, %76, %71 : vector<16x128xi1>, vector<16x128xf32>
    %78 = arith.select %53, %20, %74 : vector<16x128xi1>, vector<16x128xf32>
    %79 = arith.select %51, %20, %77 : vector<16x128xi1>, vector<16x128xf32>
    %80 = arith.subf %78, %79 : vector<16x128xf32>
    %81 = arith.mulf %65, %80 : vector<16x128xf32>
    %c15_i32_35 = arith.constant 15 : i32
    %82 = tpu.dynamic_rotate %23 by %c15_i32_35 dim 0 : vector<16x128xf32>, i32 -> vector<16x128xf32>
    %c1_i32_36 = arith.constant 1 : i32
    %83 = tpu.dynamic_rotate %23 by %c1_i32_36 dim 0 : vector<16x128xf32>, i32 -> vector<16x128xf32>
    %84 = vector.shape_cast %43 : vector<1x128xf32> to vector<1x128xf32>
    %85 = vector.broadcast %84 : vector<1x128xf32> to vector<16x128xf32>
    %86 = arith.select %57, %85, %82 : vector<16x128xi1>, vector<16x128xf32>
    %87 = vector.shape_cast %45 : vector<1x128xf32> to vector<1x128xf32>
    %88 = vector.broadcast %87 : vector<1x128xf32> to vector<16x128xf32>
    %89 = arith.select %55, %88, %83 : vector<16x128xi1>, vector<16x128xf32>
    %90 = arith.select %53, %23, %86 : vector<16x128xi1>, vector<16x128xf32>
    %91 = arith.select %51, %23, %89 : vector<16x128xi1>, vector<16x128xf32>
    %92 = arith.subf %90, %91 : vector<16x128xf32>
    %93 = arith.mulf %65, %92 : vector<16x128xf32>
    %c127_i32 = arith.constant 127 : i32
    %94 = tpu.dynamic_rotate %20 by %c127_i32 dim 1 : vector<16x128xf32>, i32 -> vector<16x128xf32>
    %c1_i32_37 = arith.constant 1 : i32
    %95 = tpu.dynamic_rotate %20 by %c1_i32_37 dim 1 : vector<16x128xf32>, i32 -> vector<16x128xf32>
    %96 = arith.select %61, %20, %94 : vector<16x128xi1>, vector<16x128xf32>
    %97 = arith.select %59, %20, %95 : vector<16x128xi1>, vector<16x128xf32>
    %98 = arith.subf %96, %97 : vector<16x128xf32>
    %99 = arith.mulf %69, %98 : vector<16x128xf32>
    %c127_i32_38 = arith.constant 127 : i32
    %100 = tpu.dynamic_rotate %23 by %c127_i32_38 dim 1 : vector<16x128xf32>, i32 -> vector<16x128xf32>
    %c1_i32_39 = arith.constant 1 : i32
    %101 = tpu.dynamic_rotate %23 by %c1_i32_39 dim 1 : vector<16x128xf32>, i32 -> vector<16x128xf32>
    %102 = arith.select %61, %23, %100 : vector<16x128xi1>, vector<16x128xf32>
    %103 = arith.select %59, %23, %101 : vector<16x128xi1>, vector<16x128xf32>
    %104 = arith.subf %102, %103 : vector<16x128xf32>
    %105 = arith.mulf %69, %104 : vector<16x128xf32>
    %cst_40 = arith.constant 1.000000e+00 : f32
    %106 = vector.broadcast %cst_40 : f32 to vector<16x128xf32>
    %107 = arith.addf %81, %106 : vector<16x128xf32>
    %cst_41 = arith.constant 1.000000e+00 : f32
    %108 = vector.broadcast %cst_41 : f32 to vector<16x128xf32>
    %109 = arith.addf %105, %108 : vector<16x128xf32>
    %110 = arith.mulf %107, %109 : vector<16x128xf32>
    %111 = arith.mulf %99, %93 : vector<16x128xf32>
    %112 = arith.subf %110, %111 : vector<16x128xf32>
    %cst_42 = arith.constant 0.000000e+00 : f32
    %113 = vector.broadcast %cst_42 : f32 to vector<16x128xf32>
    %114 = arith.subf %113, %112 : vector<16x128xf32>
    %cst_43 = arith.constant 0.000000e+00 : f32
    %115 = vector.broadcast %cst_43 : f32 to vector<16x128xf32>
    %116 = arith.maximumf %114, %115 : vector<16x128xf32>
    %117 = vector.extract_strided_slice %116 {offsets = [0, 0], sizes = [8, 128], strides = [1, 1]} : vector<16x128xf32> to vector<8x128xf32>
    %118 = vector.extract_strided_slice %116 {offsets = [8, 0], sizes = [8, 128], strides = [1, 1]} : vector<16x128xf32> to vector<8x128xf32>
    %119 = arith.addf %117, %118 : vector<8x128xf32>
    %c0_44 = arith.constant 0 : index
    %c0_45 = arith.constant 0 : index
    %120 = vector.load %arg3[%c0_44, %c0_45] : memref<8x128xf32, #tpu.memory_space<vmem>>, vector<8x128xf32>
    %121 = arith.addf %120, %119 : vector<8x128xf32>
    %c0_46 = arith.constant 0 : index
    %c0_47 = arith.constant 0 : index
    %122 = vector.load %arg3[%c0_46, %c0_47] : memref<8x128xf32, #tpu.memory_space<vmem>>, vector<8x128xf32>
    tpu.vector_store %arg3[%c0_46, %c0_47], %121 {strides = array<i32>} : memref<8x128xf32, #tpu.memory_space<vmem>>, vector<8x128xf32>,
    %123 = vector.extract_strided_slice %20 {offsets = [15, 0], sizes = [1, 128], strides = [1, 1]} : vector<16x128xf32> to vector<1x128xf32>
    %c0_48 = arith.constant 0 : index
    %c0_49 = arith.constant 0 : index
    %124 = vector.load %arg4[%c0_48, %c0_49] : memref<2x128xf32, #tpu.memory_space<vmem>>, vector<1x128xf32>
    tpu.vector_store %arg4[%c0_48, %c0_49], %123 {strides = array<i32>} : memref<2x128xf32, #tpu.memory_space<vmem>>, vector<1x128xf32>,
    %125 = vector.extract_strided_slice %23 {offsets = [15, 0], sizes = [1, 128], strides = [1, 1]} : vector<16x128xf32> to vector<1x128xf32>
    %c1_50 = arith.constant 1 : index
    %c0_51 = arith.constant 0 : index
    %126 = vector.load %arg4[%c1_50, %c0_51] : memref<2x128xf32, #tpu.memory_space<vmem>>, vector<1x128xf32>
    tpu.vector_store %arg4[%c1_50, %c0_51], %125 {strides = array<i32>} : memref<2x128xf32, #tpu.memory_space<vmem>>, vector<1x128xf32>,
    return
  }
  func.func @transform_0(%arg0: i32) -> (i32, i32, i32) {
    %c0_i32 = arith.constant 0 : i32
    %c0_i32_0 = arith.constant 0 : i32
    %c0_i32_1 = arith.constant 0 : i32
    return %c0_i32, %arg0, %c0_i32_0 : i32, i32, i32
  }
  func.func @transform_1(%arg0: i32) -> (i32, i32, i32) {
    %c1_i32 = arith.constant 1 : i32
    %0 = arith.addi %arg0, %c1_i32 : i32
    %c2_i32 = arith.constant 2 : i32
    %1 = arith.muli %0, %c2_i32 : i32
    %c1_i32_0 = arith.constant 1 : i32
    %2 = arith.minsi %1, %c1_i32_0 : i32
    %c0_i32 = arith.constant 0 : i32
    %c0_i32_1 = arith.constant 0 : i32
    %c0_i32_2 = arith.constant 0 : i32
    return %c0_i32, %2, %c0_i32_1 : i32, i32, i32
  }
  func.func @transform_2(%arg0: i32) -> (i32, i32) {
    %c0_i32 = arith.constant 0 : i32
    %c0_i32_0 = arith.constant 0 : i32
    %c0_i32_1 = arith.constant 0 : i32
    return %c0_i32, %c0_i32_0 : i32, i32
  }
}

</mosaic_0001>

<bundles_post_ra>
// kernel: tpu_custom_call.1
= control target key start
LH: loop header
LB: loop body
LE: loop exit
PB: predicated region body
PF: predicated region fallthrough
CT: control target
= control target key end

     0   :  { %7 = vsyncpa [#allocation4], 0  ;;  %s1337_s0 = inlined_call_operand.hbm [shape: f32[3,16,128], index: 0, kind: input, shape index: {}]   ;;  %s1338_s1 = inlined_call_operand.hbm [shape: f32[3,16,128], index: 1, kind: input, shape index: {}]   ;;  %s1339_s2 = inlined_call_operand.hbm [shape: f32[8,128], index: 2, kind: output, shape index: {}]  }
   0x1   :  { %8 = vsyncpa [#allocation7], 0 }
   0x2   :  { %9 = vsyncpa [#allocation5], 0  ;;  %s1012_s9 = smov [#allocation3]   ;;  %s1045_s13 = scalar_lea.hbm %s1338_s1, 128 }
   0x3   :  { %s15_s10 = sshll.u32 %s1012_s9, 4  ;;  %s937_s16 = scalar_lea.hbm %s1337_s0, 768  ;;  %s16_s10 = int_to_ptr.vmem [resolvable:$true] %s15_s10 }
   0x4   :  { %p938_p0 = scmp.ne.s32.totalorder %s1337_s0, %s937_s16  ;;  %p941_p1 = scmp.lt.u32.totalorder %s937_s16, %s1337_s0 }
   0x6   :  { %p943_p2 = pnand %p941_p1, %p938_p0 }
   0x8   :  { %946 = shalt.err (!%p943_p2)
}
   0x9   :  { %s947_s21 = scalar_lea.vmem %s16_s10, 768  ;;  %p952_p4 = scmp.lt.s32.totalorder %s16_s10, %s16_s10 }
   0xa   :  { %p948_p3 = scmp.ne.s32.totalorder %s16_s10, %s947_s21  ;;  %p953_p5 = scmp.lt.s32.totalorder %s947_s21, %s947_s21 }
   0xc   :  { %p954_p6 = por %p953_p5, %p952_p4 }
   0xe   :  { %p955_p7 = pnand %p954_p6, %p948_p3 }
  0x10   :  { %958 = shalt.err (!%p955_p7)
}
  0x11   :  { %s1013_s22 = smov 128   ;;  %s1014_s23 = smov 8  }
  0x12   :  { %21 = dma.hbm_to_vmem [thread:$0]  %s1337_s0, 768, %s16_s10, [#allocation4], %s1013_s22, %s1013_s22, %s1014_s23  }
  0x13   :  { %s1015_s26 = smov [#allocation6]   ;;  %s983_s30 = scalar_lea.hbm %s1338_s1, 512 }
  0x14   :  { %s33_s27 = sshll.u32 %s1015_s26, 4  ;;  %p960_p8 = scmp.ne.s32.totalorder %s1045_s13, %s983_s30  ;;  %s34_s27 = int_to_ptr.vmem [resolvable:$true] %s33_s27 }
  0x15   :  { %s961_s5 = scalar_lea.hbm %s1338_s1, 768  ;;  %p962_p9 = scmp.lt.u32.totalorder %s1045_s13, %s1338_s1 }
  0x16   :  { %p963_p10 = scmp.lt.u32.totalorder %s961_s5, %s983_s30  ;;  %p965_p12 = scmp.lt.u32.totalorder %s983_s30, %s1045_s13 }
  0x18   :  { %p964_p11 = por %p963_p10, %p962_p9 }
  0x1a   :  { %p966_p13 = por %p965_p12, %p964_p11 }
  0x1c   :  { %p967_p0 = pnand %p966_p13, %p960_p8 }
  0x1e   :  { %970 = shalt.err (!%p967_p0)
}
  0x1f   :  { %s971_s0 = scalar_lea.vmem %s34_s27, 384  ;;  %p976_p2 = scmp.lt.s32.totalorder %s34_s27, %s34_s27 }
  0x20   :  { %p972_p1 = scmp.ne.s32.totalorder %s34_s27, %s971_s0  ;;  %p977_p3 = scmp.lt.s32.totalorder %s971_s0, %s971_s0 }
  0x22   :  { %p978_p4 = por %p977_p3, %p976_p2 }
  0x24   :  { %p979_p5 = pnand %p978_p4, %p972_p1 }
  0x26   :  { %982 = shalt.err (!%p979_p5)
}
  0x27   :  { %s1016_s8 = smov 256  }
  0x28   :  { %39 = dma.hbm_to_vmem [thread:$0]  %s1045_s13, 384, %s34_s27, [#allocation7], %s1016_s8, %s1013_s22, %s1014_s23  }
  0x29   :  { %1006 = dma.done.wait [#allocation4], 768  }
  0x2a   :  { %1007 = vsyncadd [#allocation4], 4294966528 }
  0x2b   :  { %1008 = dma.done.wait [#allocation7], 384  }
  0x2c   :  { %1009 = vsyncadd [#allocation7], 4294966912  ;;  %v56_v0 = vld [vmem:[#allocation3] sm:$0xff]  ;;  %v57_v2 = vld [vmem:[#allocation3 + $0x8] sm:$0xff]  ;;  %v1017_v31 = vmov 683565275  }
  0x2d   :  { %v1072_v1 = vmul.f32 3.1415927, %v56_v0  ;;  %v1074_v3 = vmul.f32 3.1415927, %v57_v2  ;;  %v494_v8 = vld [vmem:[#allocation6] sm:$0x1] }
  0x2e   :  { %v1084_v14 = vmul.f32 3.1415927, %v494_v8  ;;  %v1018_v33 = vmov 2475754826   ;;  %v1019_v35 = vmov 2131351028  }
  0x2f   :  { %v66_v4 = vand.u32 2147483647, %v1072_v1  ;;  %v69_v5 = vand.u32 2139095040, %v1072_v1  ;;  %v169_v6 = vand.u32 2147483647, %v1074_v3  ;;  %v172_v7 = vand.u32 2139095040, %v1074_v3 }
  0x30   :  { %v503_v17 = vand.u32 2139095040, %v1084_v14  ;;  %v1020_v37 = vmov 2102212464   ;;  %v1021_v39 = vmov 920167782   ;;  %s1023_s1 = smov 1  }
  0x31   :  { %v70_v9 = vshrl.u32 %v69_v5, 23  ;;  %v73_v10 = vand.u32 8388607, %v66_v4  ;;  %v173_v11 = vshrl.u32 %v172_v7, 23  ;;  %v176_v12 = vand.u32 8388607, %v169_v6 }
  0x32   :  { %v504_v21 = vshrl.u32 %v503_v17, 23  ;;  %v1022_v47 = vmov 1326507024   ;;  %s1024_s9 = smov 127   ;;  %s1026_s10 = smov [#allocation8]  }
  0x33   :  { %v868_v13 = vadd.s32 4294967169, %v70_v9  ;;  %v872_v15 = vadd.s32 4294967169, %v173_v11  ;;  %v74_v18 = vor.u32 8388608, %v73_v10  ;;  %v177_v19 = vor.u32 8388608, %v176_v12  ;;  %s856_s11 = sshll.u32 %s1026_s10, 4  ;;  %s857_s11 = int_to_ptr.vmem [resolvable:$true] %s856_s11 }
  0x34   :  { %v1091_v29 = vadd.s32 4294967169, %v504_v21  ;;  %s984_s12 = scalar_lea.vmem %s857_s11, 128  ;;  %p989_p7 = scmp.lt.s32.totalorder %s857_s11, %s857_s11 }
  0x35   :  { %v76_v16 = vadd.s32 1, %v868_v13  ;;  %v179_v20 = vadd.s32 1, %v872_v15  ;;  %v1087_v26 = vshll.u32 %v74_v18, 8  ;;  %v1089_v28 = vshll.u32 %v177_v19, 8  ;;  %p985_p6 = scmp.ne.s32.totalorder %s857_s11, %s984_s12  ;;  %p990_p8 = scmp.lt.s32.totalorder %s984_s12, %s984_s12 }
  0x37   :  { %vm77_vm0 = vcmp.gt.s32.totalorder %v76_v16, 0  ;;  %vm180_vm1 = vcmp.gt.s32.totalorder %v179_v20, 0  ;;  %p991_p9 = por %p990_p8, %p989_p7 }
  0x38   :  { %v78_v22 = vsel %vm77_vm0, %v76_v16, 0  ;;  %v181_v25 = vsel %vm180_vm1, %v179_v20, 0 }
  0x39   :  { %v79_v23 = vshrl.u32 %v78_v22, 5  ;;  %v80_v24 = vand.u32 31, %v78_v22  ;;  %v183_v27 = vand.u32 31, %v181_v25  ;;  %v1098_v41 = vshrl.u32 %v181_v25, 5  ;;  %p992_p10 = pnand %p991_p9, %p985_p6 }
  0x3b   :  { %v81_v30 = vsub.s32 32, %v80_v24  ;;  %v83_v32 = vshll.u32 %v1017_v31, %v80_v24  ;;  %v86_v34 = vshll.u32 %v1018_v33, %v80_v24  ;;  %v89_v36 = vshll.u32 %v1019_v35, %v80_v24 }
  0x3c   :  { %v92_v38 = vshll.u32 %v1020_v37, %v80_v24  ;;  %v95_v40 = vshll.u32 %v1021_v39, %v80_v24  ;;  %vm98_vm2 = vcmp.lt.s32.totalorder %v79_v23, 1  ;;  %vm99_vm3 = vcmp.lt.s32.totalorder %v79_v23, 2 }
  0x3d   :  { %v82_v42 = vshrl.u32 %v1017_v31, %v81_v30  ;;  %v84_v43 = vshrl.u32 %v1018_v33, %v81_v30  ;;  %v87_v44 = vshrl.u32 %v1019_v35, %v81_v30  ;;  %v90_v45 = vshrl.u32 %v1020_v37, %v81_v30 }
  0x3e   :  { %v93_v46 = vshrl.u32 %v1021_v39, %v81_v30  ;;  %v96_v48 = vshrl.u32 %v1022_v47, %v81_v30  ;;  %vm101_vm4 = vcmp.lt.s32.totalorder %v79_v23, 4  ;;  %v184_v52 = vsub.s32 32, %v183_v27 }
  0x3f   :  { %v85_v49 = vor.u32 %v84_v43, %v83_v32  ;;  %v88_v50 = vor.u32 %v87_v44, %v86_v34  ;;  %v91_v51 = vor.u32 %v90_v45, %v89_v36  ;;  %vm100_vm5 = vcmp.lt.s32.totalorder %v79_v23, 3 }
  0x40   :  { %v94_v53 = vor.u32 %v93_v46, %v92_v38  ;;  %v97_v54 = vor.u32 %v96_v48, %v95_v40  ;;  %v186_v55 = vshll.u32 %v1017_v31, %v183_v27  ;;  %v189_v63 = vshll.u32 %v1018_v33, %v183_v27 }
  0x41   :  { %v102_v56 = vsel %vm98_vm2, %v82_v42, %v85_v49  ;;  %v103_v57 = vsel %vm101_vm4, %v91_v51, 2102212464  ;;  %v106_v58 = vsel %vm98_vm2, %v85_v49, %v88_v50  ;;  %v110_v59 = vsel %vm98_vm2, %v88_v50, %v91_v51 }
  0x42   :  { %v104_v60 = vsel %vm100_vm5, %v88_v50, %v103_v57  ;;  %v107_v61 = vsel %vm101_vm4, %v94_v53, 920167782  ;;  %v111_v62 = vsel %vm101_vm4, %v97_v54, 1326507024  ;;  %v185_v5 = vshrl.u32 %v1017_v31, %v184_v52 }
  0x43   :  { %v108_v0 = vsel %vm100_vm5, %v91_v51, %v107_v61  ;;  %v112_v2 = vsel %vm100_vm5, %v94_v53, %v111_v62  ;;  %v187_v7 = vshrl.u32 %v1018_v33, %v184_v52  ;;  %v105_v8 = vsel %vm99_vm3, %v102_v56, %v104_v60 }
  0x44   :  { %v109_v9 = vsel %vm99_vm3, %v106_v58, %v108_v0  ;;  %v113_v10 = vsel %vm99_vm3, %v110_v59, %v112_v2  ;;  %v190_v11 = vshrl.u32 %v1019_v35, %v184_v52  ;;  %v192_v19 = vshll.u32 %v1019_v35, %v183_v27 }
  0x45   :  { %v1118_v12 = vmul.u32.u64.low %v1087_v26, %v113_v10  ;;  %v1119_v13 = vmul.u32.u64.high %v1087_v26, %v113_v10, %v1118_v12  ;;  %v1122_v15 = vmul.u32.u64.low %v1087_v26, %v109_v9  ;;  %v1123_v16 = vmul.u32.u64.high %v1087_v26, %v109_v9, %v1122_v15 }
  0x46   :  { %v188_v17 = vor.u32 %v187_v7, %v186_v55  ;;  %v191_v18 = vor.u32 %v190_v11, %v189_v63  ;;  %v193_v20 = vshrl.u32 %v1020_v37, %v184_v52  ;;  %v195_v21 = vshll.u32 %v1020_v37, %v183_v27 }
  0x47   :  { %v196_v22 = vshrl.u32 %v1021_v39, %v184_v52  ;;  %v198_v23 = vshll.u32 %v1021_v39, %v183_v27  ;;  %v199_v24 = vshrl.u32 %v1022_v47, %v184_v52  ;;  %v121_v25 = vmul.u32 %v1087_v26, %v105_v8 }
  0x48   :  { %v194_v30 = vor.u32 %v193_v20, %v192_v19  ;;  %vm201_vm6 = vcmp.lt.s32.totalorder %v1098_v41, 1  ;;  %vm202_vm7 = vcmp.lt.s32.totalorder %v1098_v41, 2  ;;  %vm123_vm8 = vc.u32 %v1119_v13, %v1122_v15 }
  0x49   :  { %v124_v32 = vadd.s32 1, %v1123_v16  ;;  %v197_v34 = vor.u32 %v196_v22, %v195_v21  ;;  %vm203_vm9 = vcmp.lt.s32.totalorder %v1098_v41, 3  ;;  %v200_v36 = vor.u32 %v199_v24, %v198_v23 }
  0x4a   :  { %vm204_vm10 = vcmp.lt.s32.totalorder %v1098_v41, 4  ;;  %v205_v27 = vsel %vm201_vm6, %v185_v5, %v188_v17  ;;  %v209_v38 = vsel %vm201_vm6, %v188_v17, %v191_v18  ;;  %v213_v43 = vsel %vm201_vm6, %v191_v18, %v194_v30 }
  0x4b   :  { %v125_v26 = vsel %vm123_vm8, %v124_v32, %v1123_v16  ;;  %v206_v40 = vsel %vm204_vm10, %v194_v30, 2102212464  ;;  %v210_v42 = vsel %vm204_vm10, %v197_v34, 920167782  ;;  %v214_v48 = vsel %vm204_vm10, %v200_v36, 1326507024 }
  0x4c   :  { %v126_v44 = vadd.s32 %v125_v26, %v121_v25  ;;  %v207_v45 = vsel %vm203_vm9, %v191_v18, %v206_v40  ;;  %v211_v46 = vsel %vm203_vm9, %v194_v30, %v210_v42  ;;  %v215_v51 = vsel %vm203_vm9, %v197_v34, %v214_v48 }
  0x4d   :  { %v208_v49 = vsel %vm202_vm7, %v205_v27, %v207_v45  ;;  %v212_v50 = vsel %vm202_vm7, %v209_v38, %v211_v46  ;;  %v216_v53 = vsel %vm202_vm7, %v213_v43, %v215_v51  ;;  %v510_v58 = vadd.s32 1, %v1091_v29 }
  0x4e   :  { %v127_v52 = vadd.s32 536870912, %v126_v44  ;;  %v1148_v54 = vmul.u32.u64.low %v1089_v28, %v212_v50  ;;  %v1149_v55 = vmul.u32.u64.high %v1089_v28, %v212_v50, %v1148_v54  ;;  %v224_v60 = vmul.u32 %v1089_v28, %v208_v49 }
  0x4f   :  { %v1153_v56 = vmul.u32.u64.low %v1089_v28, %v216_v53  ;;  %v1154_v57 = vmul.u32.u64.high %v1089_v28, %v216_v53, %v1153_v56  ;;  %vm511_vm11 = vcmp.gt.s32.totalorder %v510_v58, 0  ;;  %v500_v16 = vand.u32 2147483647, %v1084_v14 }
  0x50   :  { %v1157_v59 = vshrl.u32 %v127_v52, 30  ;;  %v227_v41 = vadd.s32 1, %v1149_v55  ;;  %v512_v62 = vsel %vm511_vm11, %v510_v58, 0  ;;  %vm68_vm3 = vcmp.lt.s32.totalorder %v1072_v1, 0 }
  0x51   :  { %vm226_vm12 = vc.u32 %v1154_v57, %v1148_v54  ;;  %v514_v63 = vand.u32 31, %v512_v62  ;;  %v513_v36 = vshrl.u32 %v512_v62, 5  ;;  %v225_v62 = vadd.s32 %v1148_v54, %v1154_v57 }
  0x52   :  { %v129_v61 = vshll.u32 %v1157_v59, 30  ;;  %v228_v2 = vsel %vm226_vm12, %v227_v41, %v1149_v55  ;;  %v152_v53 = vsub.s32 4, %v1157_v59  ;;  %vm67_vm4 = vcmp.le.f32.partialorder %v66_v4, 0.7853982 }
  0x53   :  { %v229_v5 = vadd.s32 %v228_v2, %v224_v60  ;;  %v515_v7 = vsub.s32 32, %v514_v63  ;;  %v517_v29 = vshll.u32 %v1017_v31, %v514_v63  ;;  %v520_v28 = vshll.u32 %v1018_v33, %v514_v63 }
  0x54   :  { %v130_v0 = vsub.s32 %v126_v44, %v129_v61  ;;  %v523_v21 = vshll.u32 %v1019_v35, %v514_v63  ;;  %v526_v23 = vshll.u32 %v1020_v37, %v514_v63  ;;  %v529_v27 = vshll.u32 %v1021_v39, %v514_v63 }
  0x55   :  { %v230_v9 = vadd.s32 536870912, %v229_v5  ;;  %v518_v10 = vshrl.u32 %v1018_v33, %v515_v7  ;;  %v521_v11 = vshrl.u32 %v1019_v35, %v515_v7  ;;  %v524_v22 = vshrl.u32 %v1020_v37, %v515_v7 }
  0x56   :  { %v132_v8 = vsub.s32 0, %v130_v0  ;;  %v507_v33 = vand.u32 8388607, %v500_v16  ;;  %v527_v32 = vshrl.u32 %v1021_v39, %v515_v7  ;;  %v530_v38 = vshrl.u32 %v1022_v47, %v515_v7 }
  0x57   :  { %v1170_v17 = vshrl.u32 %v230_v9, 30  ;;  %v519_v18 = vor.u32 %v518_v10, %v517_v29  ;;  %v522_v19 = vor.u32 %v521_v11, %v520_v28  ;;  %v525_v30 = vor.u32 %v524_v22, %v523_v21 }
  0x58   :  { %v869_v12 = vmin.u32 %v132_v8, %v130_v0  ;;  %v122_v35 = vadd.s32 %v1122_v15, %v1119_v13  ;;  %v528_v37 = vor.u32 %v527_v32, %v526_v23  ;;  %v516_v42 = vshrl.u32 %v1017_v31, %v515_v7 }
  0x59   :  { %v232_v24 = vshll.u32 %v1170_v17, 30  ;;  %v531_v43 = vor.u32 %v530_v38, %v529_v27  ;;  %v508_v49 = vor.u32 8388608, %v507_v33  ;;  %vm532_vm14 = vcmp.lt.s32.totalorder %v513_v36, 1 }
  0x5a   :  { %v134_v20 = vclz %v869_v12  ;;  %vm534_vm15 = vcmp.lt.s32.totalorder %v513_v36, 3  ;;  %vm535_vm0 = vcmp.lt.s32.totalorder %v513_v36, 4  ;;  %v536_v47 = vsel %vm532_vm14, %v516_v42, %v519_v18 }
  0x5b   :  { %v233_v34 = vsub.s32 %v229_v5, %v232_v24  ;;  %v537_v52 = vsel %vm535_vm0, %v525_v30, 2102212464  ;;  %v540_v31 = vsel %vm532_vm14, %v519_v18, %v522_v19  ;;  %vm533_vm1 = vcmp.lt.s32.totalorder %v513_v36, 2 }
  0x5c   :  { %v870_v25 = vadd.s32 4294967294, %v134_v20  ;;  %v548_v56 = vshll.u32 %v508_v49, 8  ;;  %v538_v61 = vsel %vm534_vm15, %v522_v19, %v537_v52  ;;  %v541_v41 = vsel %vm535_vm0, %v528_v37, 920167782 }
  0x5d   :  { %v235_v40 = vsub.s32 0, %v233_v34  ;;  %v539_v63 = vsel %vm533_vm1, %v536_v47, %v538_v61  ;;  %v544_v9 = vsel %vm532_vm14, %v522_v19, %v525_v30  ;;  %v545_v11 = vsel %vm535_vm0, %v531_v43, 1326507024 }
  0x5e   :  { %vm871_vm13 = vcmp.lt.s32.totalorder %v870_v25, 0  ;;  %v153_v12 = vsel %vm68_vm3, %v152_v53, %v1157_v59  ;;  %v546_v21 = vsel %vm534_vm15, %v528_v37, %v545_v11  ;;  %v255_v4 = vsub.s32 4, %v1170_v17 }
  0x5f   :  { %v137_v26 = vsel %vm871_vm13, 0, %v870_v25  ;;  %v873_v48 = vmin.u32 %v235_v40, %v233_v34  ;;  %v547_v19 = vsel %vm533_vm1, %v544_v9, %v546_v21  ;;  %v155_v32 = vsel %vm67_vm4, 0, %v153_v12 }
  0x60   :  { %v138_v44 = vsub.s32 32, %v137_v26  ;;  %v139_v45 = vshll.u32 %v130_v0, %v137_v26  ;;  %v142_v46 = vsub.s32 4294967266, %v137_v26  ;;  %v542_v0 = vsel %vm534_vm15, %v525_v30, %v541_v41 }
  0x61   :  { %v237_v51 = vclz %v873_v48  ;;  %v543_v7 = vsel %vm533_vm1, %v540_v31, %v542_v0  ;;  %v1208_v25 = vmul.u32.u64.low %v548_v56, %v547_v19  ;;  %v1209_v33 = vmul.u32.u64.high %v548_v56, %v547_v19, %v1208_v25  ;;  %v60_v19 = vld [vmem:[#allocation3 + $0x18] sm:$0xff] }
  0x62   :  { %v140_v50 = vshrl.u32 %v122_v35, %v138_v44  ;;  %v143_v39 = vadd.s32 127, %v142_v46  ;;  %v1198_v54 = vmul.u32.u64.low %v548_v56, %v543_v7  ;;  %v1199_v57 = vmul.u32.u64.high %v548_v56, %v543_v7, %v1198_v54 }
  0x63   :  { %v874_v55 = vadd.s32 4294967294, %v237_v51  ;;  %v555_v35 = vmul.u32 %v548_v56, %v539_v63  ;;  %v365_v26 = vadd.s32 3, %v155_v32  ;;  %vm171_vm6 = vcmp.lt.s32.totalorder %v1074_v3, 0 }
  0x64   :  { %v141_v13 = vor.u32 %v140_v50, %v139_v45  ;;  %v144_v15 = vshll.u32 %v143_v39, 23  ;;  %v558_v59 = vadd.s32 1, %v1199_v57  ;;  %v1217_v37 = vadd.s32 %v1198_v54, %v1209_v33 }
  0x65   :  { %vm875_vm2 = vcmp.lt.s32.totalorder %v874_v55, 0  ;;  %vm557_vm5 = vc.u32 %v1209_v33, %v1198_v54  ;;  %vm170_vm7 = vcmp.le.f32.partialorder %v169_v6, 0.7853982  ;;  %v256_v45 = vsel %vm171_vm6, %v255_v4, %v1170_v17 }
  0x66   :  { %v145_v58 = vor.u32 4788187, %v144_v15  ;;  %v148_v60 = vcvt.s32.f32 %v141_v13  ;;  %v240_v5 = vsel %vm875_vm2, 0, %v874_v55  ;;  %v559_v40 = vsel %vm557_vm5, %v558_v59, %v1199_v57 }
  0x67   :  { %v241_v29 = vsub.s32 32, %v240_v5  ;;  %v242_v8 = vshll.u32 %v233_v34, %v240_v5  ;;  %v245_v28 = vsub.s32 4294967266, %v240_v5  ;;  %v560_v43 = vadd.s32 %v559_v40, %v555_v35  ;;  %v62_v5 = vld [vmem:[#allocation3 + $0x20] sm:$0xff] }
  0x68   :  { %v146_v2 = vand.u32 2147483647, %v145_v58  ;;  %v159_v48 = vand.u32 3, %v155_v32  ;;  %v366_v49 = vand.u32 3, %v365_v26  ;;  %v258_v47 = vsel %vm170_vm7, 0, %v256_v45  ;;  %v59_v58 = vld [vmem:[#allocation3 + $0x10] sm:$0xff] }
  0x69   :  { %v243_v18 = vshrl.u32 %v225_v62, %v241_v29  ;;  %v246_v20 = vadd.s32 127, %v245_v28  ;;  %v561_v46 = vadd.s32 536870912, %v560_v43  ;;  %v469_v17 = vadd.s32 3, %v258_v47  ;;  %v63_v32 = vld [vmem:[#allocation3 + $0x28] sm:$0xff] }
  0x6a   :  { %v149_v10 = vmul.f32 %v148_v60, %v146_v2  ;;  %vm164_vm8 = vcmp.eq.s32.totalorder %v159_v48, 2  ;;  %vm371_vm9 = vcmp.eq.s32.totalorder %v366_v49, 2  ;;  %vm161_vm10 = vcmp.eq.s32.totalorder %v159_v48, 0 }
  0x6b   :  { %v244_v23 = vor.u32 %v243_v18, %v242_v8  ;;  %v247_v24 = vshll.u32 %v246_v20, 23  ;;  %v1225_v39 = vshrl.u32 %v561_v46, 30  ;;  %vm368_vm11 = vcmp.eq.s32.totalorder %v366_v49, 0 }
  0x6c   :  { %v150_v22 = vxor.u32 2147483648, %v149_v10  ;;  %vm160_vm12 = vcmp.lt.s32.totalorder %v159_v48, 2  ;;  %vm367_vm13 = vcmp.lt.s32.totalorder %v366_v49, 2  ;;  %vm158_vm14 = vweird.f32 %v1072_v1 }
  0x6d   :  { %v248_v27 = vor.u32 4788187, %v247_v24  ;;  %v251_v38 = vcvt.s32.f32 %v244_v23  ;;  %v563_v13 = vshll.u32 %v1225_v39, 30  ;;  %v262_v0 = vand.u32 3, %v258_v47  ;;  %v1250_v47 = vld [vmem:[#allocation2 + $0x1] ss:$0 sm:$0xff] }
  0x6e   :  { %v151_v30 = vsel %vm68_vm3, %v150_v22, %v149_v10  ;;  %v470_v2 = vand.u32 3, %v469_v17  ;;  %vm261_vm5 = vweird.f32 %v1074_v3 }
  0x6f   :  { %v154_v34 = vsel %vm67_vm4, %v1072_v1, %v151_v30  ;;  %v249_v36 = vand.u32 2147483647, %v248_v27  ;;  %v564_v53 = vsub.s32 %v560_v43, %v563_v13  ;;  %vm267_vm15 = vcmp.eq.s32.totalorder %v262_v0, 2 }
  0x70   :  { %925 = vcosq.f32 %v154_v34  ;;  %vm475_vm0 = vcmp.eq.s32.totalorder %v470_v2, 2  ;;  %vm264_vm1 = vcmp.eq.s32.totalorder %v262_v0, 0  ;;  %vm472_vm2 = vcmp.eq.s32.totalorder %v470_v2, 0 }
  0x71   :  { %927 = vsinq.f32 %v154_v34  ;;  %v252_v42 = vmul.f32 %v251_v38, %v249_v36  ;;  %v566_v41 = vsub.s32 0, %v564_v53  ;;  %vm263_vm3 = vcmp.lt.s32.totalorder %v262_v0, 2 }
  0x72   :  { %vm471_vm4 = vcmp.lt.s32.totalorder %v470_v2, 2 }
  0x73   :  { %v253_v44 = vxor.u32 2147483648, %v252_v42  ;;  %v887_v8 = vmin.u32 %v566_v41, %v564_v53 }
  0x75   :  { %v254_v50 = vsel %vm171_vm6, %v253_v44, %v252_v42  ;;  %v568_v10 = vclz %v887_v8 }
  0x76   :  { %v257_v51 = vsel %vm170_vm7, %v1074_v3, %v254_v50  ;;  %vm502_vm7 = vcmp.lt.s32.totalorder %v1084_v14, 0 }
  0x77   :  { %929 = vcosq.f32 %v257_v51  ;;  %v888_v12 = vadd.s32 4294967294, %v568_v10 }
  0x78   :  { %931 = vsinq.f32 %v257_v51  ;;  %v1248_v51 = vld [vmem:[#allocation2] ss:$0 sm:$0xff] }
  0x79   :  { %vm889_vm6 = vcmp.lt.s32.totalorder %v888_v12, 0 }
  0x7a   :  { %v926_v15 = vpop.eup %925  ;;  %v571_v30 = vsel %vm889_vm6, 0, %v888_v12 }
  0x7b   :  { %v928_v6 = vpop.eup %927  ;;  %v165_v52 = vxor.u32 2147483648, %v926_v15  ;;  %v572_v27 = vsub.s32 32, %v571_v30  ;;  %v573_v38 = vshll.u32 %v564_v53, %v571_v30  ;;  %v576_v26 = vsub.s32 4294967266, %v571_v30 }
  0x7c   :  { %v162_v31 = vxor.u32 2147483648, %v928_v6 }
  0x7d   :  { %v166_v55 = vsel %vm164_vm8, %v165_v52, %v928_v6  ;;  %v373_v56 = vsel %vm371_vm9, %v165_v52, %v928_v6  ;;  %v574_v42 = vshrl.u32 %v1217_v37, %v572_v27  ;;  %v577_v46 = vadd.s32 127, %v576_v26 }
  0x7e   :  { %v163_v60 = vsel %vm161_vm10, %v926_v15, %v162_v31  ;;  %v370_v61 = vsel %vm368_vm11, %v926_v15, %v162_v31  ;;  %v586_v52 = vsub.s32 4, %v1225_v39  ;;  %vm501_vm8 = vcmp.le.f32.partialorder %v500_v16, 0.7853982 }
  0x7f   :  { %v167_v62 = vsel %vm160_vm12, %v163_v60, %v166_v55  ;;  %v374_v63 = vsel %vm367_vm13, %v370_v61, %v373_v56  ;;  %v575_v48 = vor.u32 %v574_v42, %v573_v38  ;;  %v578_v3 = vshll.u32 %v577_v46, 23 }
  0x80   :  { %v168_v7 = vsel %vm158_vm14, nan, %v167_v62  ;;  %v375_v29 = vsel %vm158_vm14, nan, %v374_v63  ;;  %v587_v53 = vsel %vm502_vm7, %v586_v52, %v1225_v39 }
  0x81   :  { %v884_v28 = vadd.f32 -1.0, %v168_v7  ;;  %v488_v9 = vmul.f32 %v375_v29, %v59_v58  ;;  %v930_v11 = vpop.eup %929  ;;  %v484_v40 = vmul.f32 %v375_v29, %v62_v5  ;;  %v579_v13 = vor.u32 4788187, %v578_v3 }
  0x82   :  { %v932_v1 = vpop.eup %931  ;;  %v268_v57 = vxor.u32 2147483648, %v930_v11  ;;  %v582_v15 = vcvt.s32.f32 %v575_v48 }
  0x83   :  { %v490_v54 = vmul.f32 %v884_v28, %v62_v5  ;;  %v265_v20 = vxor.u32 2147483648, %v932_v1  ;;  %v482_v45 = vmul.f32 %v884_v28, %v59_v58  ;;  %v580_v6 = vand.u32 2147483647, %v579_v13  ;;  %v498_v5 = vld [vmem:[#allocation6 + $0x10] sm:$0x1] }
  0x84   :  { %v269_v21 = vsel %vm267_vm15, %v268_v57, %v932_v1  ;;  %v477_v22 = vsel %vm475_vm0, %v268_v57, %v932_v1  ;;  %v589_v58 = vsel %vm501_vm8, 0, %v587_v53  ;;  %vm592_vm15 = vweird.f32 %v1084_v14 }
  0x85   :  { %v1230_v18 = vadd.f32 %v490_v54, %v488_v9  ;;  %v266_v23 = vsel %vm264_vm1, %v930_v11, %v265_v20  ;;  %v474_v24 = vsel %vm472_vm2, %v930_v11, %v265_v20  ;;  %v1256_v37 = vsub.f32 %v482_v45, %v484_v40  ;;  %v496_v9 = vld [vmem:[#allocation6 + $0x8] sm:$0x1] }
  0x86   :  { %v270_v25 = vsel %vm263_vm3, %v266_v23, %v269_v21  ;;  %v478_v33 = vsel %vm471_vm4, %v474_v24, %v477_v22  ;;  %v583_v17 = vmul.f32 %v582_v15, %v580_v6  ;;  %v696_v60 = vadd.s32 3, %v589_v58 }
  0x87   :  { %818 = vrot.lane.b32.xlu1 %v1230_v18, %s1023_s1  ;;  %814 = vrot.lane.b32.xlu0 %v1230_v18, %s1024_s9  ;;  %v271_v59 = vsel %vm261_vm5, nan, %v270_v25  ;;  %v479_v34 = vsel %vm261_vm5, nan, %v478_v33  ;;  %v593_v61 = vand.u32 3, %v589_v58  ;;  %v745_v33 = vrot.slane %v1256_v37, 7 }
  0x88   :  { %v885_v35 = vadd.f32 -1.0, %v271_v59  ;;  %v489_v4 = vmul.f32 %v479_v34, %v60_v19  ;;  %v485_v36 = vmul.f32 %v479_v34, %v63_v32  ;;  %v584_v31 = vxor.u32 2147483648, %v583_v17 }
  0x89   :  { %v697_v41 = vand.u32 3, %v696_v60  ;;  %vm598_vm9 = vcmp.eq.s32.totalorder %v593_v61, 2  ;;  %vm595_vm11 = vcmp.eq.s32.totalorder %v593_v61, 0  ;;  %vm594_vm13 = vcmp.lt.s32.totalorder %v593_v61, 2 }
  0x8a   :  { %v491_v43 = vmul.f32 %v885_v35, %v63_v32  ;;  %v483_v44 = vmul.f32 %v885_v35, %v60_v19  ;;  %v585_v55 = vsel %vm502_vm7, %v584_v31, %v583_v17  ;;  %v716_v19 = vlaneseq }
  0x8b   :  { %v588_v56 = vsel %vm501_vm8, %v1084_v14, %v585_v55  ;;  %vm702_vm10 = vcmp.eq.s32.totalorder %v697_v41, 2  ;;  %vm699_vm12 = vcmp.eq.s32.totalorder %v697_v41, 0  ;;  %vm698_vm14 = vcmp.lt.s32.totalorder %v697_v41, 2 }
  0x8c   :  { %v1244_v49 = vadd.f32 %v491_v43, %v489_v4  ;;  %v1246_v50 = vsub.f32 %v483_v44, %v485_v36  ;;  %933 = vcosq.f32 %v588_v56  ;;  %v717_v23 = vshrl.u32 %v716_v19, 7 }
  0x8d   :  { %935 = vsinq.f32 %v588_v56  ;;  %v740_v32 = vrot.slane %v1256_v37, 1  ;;  %v770_v34 = vrot.slane %v1230_v18, 1  ;;  %v774_v27 = vrot.slane %v1230_v18, 7 }
  0x8e   :  { %820 = vrot.lane.b32.xlu1 %v1244_v49, %s1023_s1  ;;  %816 = vrot.lane.b32.xlu0 %v1244_v49, %s1024_s9  ;;  %848 = vst [vmem:[#allocation2 - $0x7] sm:$0x80] %v1246_v50  ;;  %849 = vst [vmem:[#allocation2 - $0x6] sm:$0x80] %v1244_v49  ;;  %v718_v14 = vadd.s32 8, %v717_v23  ;;  %v752_v24 = vsub.s32 0, %v717_v23 }
  0x8f   :  { %v746_v25 = vrot.slane %v1246_v50, 7  ;;  %vm747_vm0 = vcmp.lt.s32.totalorder %v717_v23, 1  ;;  %vm724_vm1 = vcmp.eq.s32.totalorder %v717_v23, 0  ;;  %v741_v30 = vrot.slane %v1246_v50, 1 }
  0x90   :  { %vm742_vm2 = vcmp.lt.s32.totalorder %v717_v23, 7  ;;  %vm727_vm3 = vcmp.eq.s32.totalorder %v718_v14, 15  ;;  %v771_v4 = vrot.slane %v1244_v49, 1  ;;  %v775_v36 = vrot.slane %v1244_v49, 7 }
  0x91   :  { %v749_v38 = vsel %vm747_vm0, %v746_v25, %v745_v33  ;;  %v744_v35 = vsel %vm742_vm2, %v741_v30, %v740_v32  ;;  %v720_v26 = vand.u32 127, %v716_v19  ;;  %v743_v3 = vsel %vm742_vm2, %v740_v32, %v741_v30 }
  0x92   :  { %800 = vrot.lane.b32.xlu1 %v1246_v50, %s1024_s9  ;;  %798 = vrot.lane.b32.xlu0 %v1256_v37, %s1024_s9  ;;  %v760_v43 = vsel %vm724_vm1, %v1248_v51, %v749_v38  ;;  %v773_v46 = vsel %vm742_vm2, %v771_v4, %v770_v34  ;;  %v777_v48 = vsel %vm747_vm0, %v775_v36, %v774_v27  ;;  %v1025_v31 = vmov 0.5  }
  0x93   :  { %vm732_vm4 = vcmp.eq.s32.totalorder %v720_v26, 0  ;;  %vm733_vm5 = vcmp.eq.s32.totalorder %v720_v26, 15  ;;  %v764_v13 = vsel %vm724_vm1, %v1256_v37, %v760_v43  ;;  %v748_v15 = vsel %vm747_vm0, %v745_v33, %v746_v25 }
  0x94   :  { %v788_v52 = vsel %vm724_vm1, %v1250_v47, %v777_v48  ;;  %v736_v53 = vsel %vm724_vm1, 1.0, %v1025_v31  ;;  %v737_v56 = vsel %vm727_vm3, 1.0, %v1025_v31  ;;  %vm738_vm6 = vmor %vm732_vm4, %vm733_vm5  ;;  %v766_v58 = vsub.f32 %v743_v3, %v764_v13 }
  0x95   :  { %v776_v47 = vsel %vm747_vm0, %v774_v27, %v775_v36 }
  0x96   :  { %804 = vrot.lane.b32.xlu1 %v1246_v50, %s1023_s1  ;;  %802 = vrot.lane.b32.xlu0 %v1256_v37, %s1023_s1  ;;  %v934_v62 = vpop.eup %933 }
  0x97   :  { %v936_v16 = vpop.eup %935  ;;  %v599_v39 = vxor.u32 2147483648, %v934_v62 }
  0x98   :  { %v596_v63 = vxor.u32 2147483648, %v936_v16 }
  0x99   :  { %v600_v0 = vsel %vm598_vm9, %v599_v39, %v936_v16  ;;  %v704_v2 = vsel %vm702_vm10, %v599_v39, %v936_v16 }
  0x9a   :  { %v597_v7 = vsel %vm595_vm11, %v934_v62, %v596_v63  ;;  %v701_v29 = vsel %vm699_vm12, %v934_v62, %v596_v63  ;;  %v772_v62 = vsel %vm742_vm2, %v770_v34, %v771_v4 }
  0x9b   :  { %v601_v8 = vsel %vm594_vm13, %v597_v7, %v600_v0  ;;  %v705_v28 = vsel %vm698_vm14, %v701_v29, %v704_v2  ;;  %v792_v0 = vsel %vm724_vm1, %v1230_v18, %v788_v52  ;;  %v739_v7 = vsel %vm738_vm6, 1.0, %v1025_v31 }
  0x9c   :  { %v602_v10 = vsel %vm592_vm15, nan, %v601_v8  ;;  %v706_v11 = vsel %vm592_vm15, nan, %v705_v28  ;;  %v768_v29 = vmul.f32 %v766_v58, %v736_v53 }
  0x9d   :  { %v894_v54 = vadd.f32 -1.0, %v602_v10  ;;  %v709_v1 = vmul.f32 %v706_v11, %v498_v5  ;;  %v711_v57 = vmul.f32 %v706_v11, %v496_v9  ;;  %v794_v11 = vsub.f32 %v772_v62, %v792_v0 }
  0x9f   :  { %v708_v12 = vmul.f32 %v894_v54, %v496_v9  ;;  %v712_v20 = vmul.f32 %v894_v54, %v498_v5 }
  0xa1   :  { %v710_v21 = vsub.f32 %v708_v12, %v709_v1  ;;  %v713_v22 = vadd.f32 %v712_v20, %v711_v57  ;;  %v830_v57 = vadd.f32 1.0, %v768_v29 }
  0xa3   :  { %v753_v59 = vrot.slane %v710_v21, %v752_v24  ;;  %v781_v45 = vrot.slane %v713_v22, %v752_v24  ;;  %v796_v22 = vmul.f32 %v794_v11, %v736_v53 }
  0xa5   :  { %v755_v44 = vsel %vm727_vm3, %v753_v59, %v744_v35  ;;  %v783_v51 = vsel %vm727_vm3, %v781_v45, %v773_v46 }
  0xa6   :  { %v763_v6 = vsel %vm727_vm3, %v1246_v50, %v755_v44  ;;  %v791_v63 = vsel %vm727_vm3, %v1244_v49, %v783_v51 }
  0xa7   :  { %v767_v41 = vsub.f32 %v763_v6, %v748_v15  ;;  %v795_v10 = vsub.f32 %v791_v63, %v776_v47 }
  0xa9   :  { %v769_v8 = vmul.f32 %v767_v41, %v737_v56  ;;  %v797_v21 = vmul.f32 %v795_v10, %v737_v56 }
  0xab   :  { %v831_v12 = vadd.f32 1.0, %v769_v8 }
  0xf9   :  { %v819_v40 = vpop.permute.xlu1 %818  ;;  %v815_v42 = vpop.permute.xlu0 %814 }
  0xfa   :  { %v824_v17 = vsel %vm732_vm4, %v1230_v18, %v819_v40  ;;  %v822_v55 = vsel %vm733_vm5, %v1230_v18, %v815_v42 }
  0xfb   :  { %v826_v2 = vsub.f32 %v822_v55, %v824_v17 }
  0xfd   :  { %v828_v54 = vmul.f32 %v826_v2, %v739_v7 }
  0xff   :  { %v832_v24 = vadd.f32 1.0, %v828_v54 }
 0x100   :  { %v821_v60 = vpop.permute.xlu1 %820  ;;  %v817_v61 = vpop.permute.xlu0 %816 }
 0x101   :  { %v825_v16 = vsel %vm732_vm4, %v1244_v49, %v821_v60  ;;  %v823_v39 = vsel %vm733_vm5, %v1244_v49, %v817_v61  ;;  %v834_v34 = vmul.f32 %v832_v24, %v830_v57 }
 0x102   :  { %v827_v5 = vsub.f32 %v823_v39, %v825_v16 }
 0x104   :  { %v801_v28 = vpop.permute.xlu1 %800  ;;  %v799_v9 = vpop.permute.xlu0 %798  ;;  %v829_v1 = vmul.f32 %v827_v5, %v739_v7 }
 0x105   :  { %v807_v18 = vsel %vm733_vm5, %v1246_v50, %v801_v28  ;;  %v806_v19 = vsel %vm733_vm5, %v1256_v37, %v799_v9 }
 0x106   :  { %v833_v25 = vadd.f32 1.0, %v829_v1 }
 0x108   :  { %v805_v20 = vpop.permute.xlu1 %804  ;;  %v803_v49 = vpop.permute.xlu0 %802  ;;  %v835_v27 = vmul.f32 %v833_v25, %v831_v12 }
 0x109   :  { %v809_v23 = vsel %vm732_vm4, %v1246_v50, %v805_v20  ;;  %v808_v14 = vsel %vm732_vm4, %v1256_v37, %v803_v49 }
 0x10a   :  { %v811_v33 = vsub.f32 %v807_v18, %v809_v23  ;;  %v810_v30 = vsub.f32 %v806_v19, %v808_v14 }
 0x10c   :  { %v813_v32 = vmul.f32 %v811_v33, %v739_v7  ;;  %v812_v59 = vmul.f32 %v810_v30, %v739_v7 }
 0x10e   :  { %v837_v38 = vmul.f32 %v813_v32, %v797_v21  ;;  %v836_v35 = vmul.f32 %v812_v59, %v796_v22 }
 0x110   :  { %v839_v4 = vsub.f32 %v835_v27, %v837_v38  ;;  %v838_v36 = vsub.f32 %v834_v34, %v836_v35 }
 0x112   :  { %v841_v40 = vsub.f32 0.0, %v839_v4  ;;  %v840_v42 = vsub.f32 0.0, %v838_v36 }
 0x114   :  { %v843_v43 = vmax.f32 %v841_v40, 0.0  ;;  %v842_v44 = vmax.f32 %v840_v42, 0.0 }
 0x116   :  { %v844_v50 = vadd.f32 %v843_v43, %v842_v44 }
 0x118   :  { %847 = vst [vmem:[#allocation8] sm:$0xff] %v844_v50 }
 0x119   :  { %995 = shalt.err (!%p992_p10)
}
 0x11a   :  { %s996_s15 = scalar_lea.hbm %s1339_s2, 128 }
 0x11b   :  { %p997_p11 = scmp.ne.s32.totalorder %s1339_s2, %s996_s15  ;;  %p1000_p12 = scmp.lt.u32.totalorder %s996_s15, %s1339_s2 }
 0x11d   :  { %p1002_p13 = pnand %p1000_p12, %p997_p11 }
 0x11f   :  { %1005 = shalt.err (!%p1002_p13)
}
 0x120   :  { %859 = dma.vmem_to_hbm [thread:$0]  %s857_s11, 128, %s1339_s2, [#allocation5]  }
 0x121   :  { %1010 = dma.done.wait [#allocation5], 128  }
 0x122   :  { %1011 = vsyncadd [#allocation5], 4294967168 }
 0x123   :  { %863 = vsyncpa [#allocation4], 1 }
 0x124   :  { %864 = vsyncpa [#allocation7], 1 }
 0x125   :  { %865 = vsyncpa [#allocation5], 1 }

</bundles_post_ra>
